<compile_context>
chip_gen: v6e
topology: v6e:2x2x1
jax: 0.10.0
libtpu: 0.0.40
codegen_flags: <defaults>
</compile_context>

<pallas_src>
import functools
import math

import jax
import jax.numpy as jnp
from jax.experimental import pallas as pl
from jax.experimental.pallas import tpu as pltpu


_MAX_TILE_N = 256    # rows per tile
_MAX_TILE_C = 8192   # classes per tile (256 x 8192 f32 = 8 MiB per buffer)


def _round_up(x, k):
    return ((x + k - 1) // k) * k


def _pick_tile_c(c, max_tile=_MAX_TILE_C):
    """Prefer a 128-multiple divisor of C (no ragged class tile / no column
    masks); otherwise fall back to max_tile with in-kernel masking."""
    if c <= max_tile:
        return c
    t = (max_tile // 128) * 128
    while t >= 128:
        if c % t == 0:
            return t
        t -= 128
    return max_tile


def _amsoftmax_kernel(cos_ref, y_ref, out_ref, m_scr, l_scr, t_scr,
                      *, s, m, n, c, tile_n, tile_c):
    i = pl.program_id(0)            # batch (row) tile  -- "parallel"
    j = pl.program_id(1)            # class (col) tile  -- "arbitrary" (reduction)
    num_j = pl.num_programs(1)

    @pl.when(j == 0)
    def _init():
        m_scr[...] = jnp.full_like(m_scr, -jnp.inf)   # running row max
        l_scr[...] = jnp.zeros_like(l_scr)            # running sum exp(logit - max)
        t_scr[...] = jnp.zeros_like(t_scr)            # raw target logit s*cos[i, y[i]]

    cos = cos_ref[...].astype(jnp.float32)            # (tile_n, tile_c)
    y_local = y_ref[...] - j * tile_c                 # (tile_n, 1) target id in tile coords

    # un-margined logits; the additive margin is applied analytically at finalize
    logits = s * cos

    local_ids = jax.lax.broadcasted_iota(jnp.int32, (tile_n, tile_c), 1)
    if c % tile_c != 0:   # static branch: only emitted when C is ragged
        logits = jnp.where(local_ids < (c - j * tile_c), logits, -jnp.inf)

    # one-hot of the target restricted to this tile's columns; padded columns
    # can never match because a valid y_local is always < c - j*tile_c.
    onehot = local_ids == y_local
    t_scr[...] += jnp.sum(jnp.where(onehot, logits, 0.0), axis=-1, keepdims=True)

    # online (flash-style) log-sum-exp over the un-margined logits
    m_prev = m_scr[...]
    m_new = jnp.maximum(m_prev, jnp.max(logits, axis=-1, keepdims=True))
    l_scr[...] = (jnp.exp(m_prev - m_new) * l_scr[...]
                  + jnp.sum(jnp.exp(logits - m_new), axis=-1, keepdims=True))
    m_scr[...] = m_new

    @pl.when(j == num_j - 1)
    def _finalize():
        m_i = m_scr[...]
        l_i = l_scr[...]
        t_raw = t_scr[...]                            # s * cos[i, y[i]]
        # analytic additive-margin correction of the log-sum-exp:
        #   lse_margined = m_i + log(l_i + (exp(-s*m) - 1) * exp(t_raw - m_i))
        corr = (math.exp(-s * m) - 1.0) * jnp.exp(t_raw - m_i)
        l_corr = jnp.maximum(l_i + corr, 1e-30)       # guard fp cancellation
        per_row = m_i + jnp.log(l_corr) - (t_raw - s * m)
        if n % tile_n != 0:   # static branch: only emitted when N is ragged
            row_ids = i * tile_n + jax.lax.broadcasted_iota(
                jnp.int32, (tile_n, 1), 0)
            # padded rows carry garbage (possibly NaN) -> neutralize via select
            per_row = jnp.where(row_ids < n, per_row, 0.0)
        # lane-dense partial-sum slab for this row tile; reduced in the wrapper
        out_ref[...] = jnp.broadcast_to(jnp.sum(per_row), out_ref.shape)


def amsoftmax_loss(cos, y, s=30.0, m=0.3, *, tile_n=None, tile_c=None):
    """AMSoftmax cross-entropy loss (mean reduction), weight=None.

    `cos` is streamed in its native dtype (feed bf16 on v5e to halve HBM
    bytes); all accumulation is f32 inside the kernel.
    """
    n, c = cos.shape
    y2d = y.astype(jnp.int32).reshape(n, 1)

    granule_n = 16 if cos.dtype.itemsize < 4 else 8
    if tile_n is None:
        if n <= granule_n:
            tile_n = n
        else:
            # >= 2 row tiles so the "parallel" batch axis can shard across
            # v7x's two TensorCores; harmless on single-TC v5e/v6e.
            tile_n = min(_MAX_TILE_N, _round_up(pl.cdiv(n, 2), granule_n))
    if tile_c is None:
        tile_c = _pick_tile_c(c)

    grid = (pl.cdiv(n, tile_n), pl.cdiv(c, tile_c))
    num_row_tiles = grid[0]

    kernel = functools.partial(
        _amsoftmax_kernel, s=float(s), m=float(m),
        n=n, c=c, tile_n=tile_n, tile_c=tile_c)

    # Allow roomy class tiles: 2x (double buffer) the cos tile + slack.
    tile_bytes = tile_n * tile_c * cos.dtype.itemsize
    vmem_limit = max(2 * tile_bytes + (8 << 20), 16 << 20)

    cost = pl.CostEstimate(
        flops=5 * n * c,
        transcendentals=n * c,
        bytes_accessed=(n * c * cos.dtype.itemsize
                        + n * 4
                        + num_row_tiles * 8 * 128 * 4),
    )

    partial = pl.pallas_call(
        kernel,
        out_shape=jax.ShapeDtypeStruct((num_row_tiles, 8, 128), jnp.float32),
        grid_spec=pltpu.PrefetchScalarGridSpec(
            num_scalar_prefetch=0,
            grid=grid,
            in_specs=[
                # NOTE: bump to pipeline_mode=pl.Buffered(3) only if an xprof
                # trace shows an exposed bubble at row-tile boundaries.
                pl.BlockSpec((tile_n, tile_c), lambda i, j: (i, j)),
                pl.BlockSpec((tile_n, 1), lambda i, j: (i, 0)),
            ],
            # Output block index is constant in j -> stays VMEM-resident across
            # the class sweep; only written at the last class step.
            out_specs=pl.BlockSpec((1, 8, 128), lambda i, j: (i, 0, 0)),
            scratch_shapes=[
                pltpu.VMEM((tile_n, 1), jnp.float32),   # running max
                pltpu.VMEM((tile_n, 1), jnp.float32),   # running sum-exp
                pltpu.VMEM((tile_n, 1), jnp.float32),   # raw target logit
            ],
        ),
        compiler_params=pltpu.CompilerParams(
            dimension_semantics=("parallel", "arbitrary"),
            vmem_limit_bytes=int(vmem_limit),
        ),
        cost_estimate=cost,
    )(cos, y2d)

    return jnp.sum(partial[:, 0, 0]) / jnp.float32(n)


def _reference_loss(cos, y, s=30.0, m=0.3):
    # Pure-JAX reference mirroring torch.nn.functional.cross_entropy semantics.
    n, c = cos.shape
    onehot = jax.nn.one_hot(y, c, dtype=jnp.float32)
    logits = s * cos.astype(jnp.float32) - s * m * onehot
    lse = jax.scipy.special.logsumexp(logits, axis=-1)
    tgt = jnp.sum(logits * onehot, axis=-1)
    return jnp.mean(lse - tgt)


if __name__ == "__main__":
    key = jax.random.PRNGKey(0)
    k1, k2, k3, k4, k5, k6 = jax.random.split(key, 6)

    S, M = 30.0, 0.3

    # Check 1: small single-tile case (whole problem fits one block).
    N, C = 8, 32
    cos = jnp.tanh(jax.random.normal(k1, (N, C), dtype=jnp.float32))
    y = jax.random.randint(k2, (N,), 0, C, dtype=jnp.int32)
    loss = amsoftmax_loss(cos, y, s=S, m=M)
    jax.block_until_ready(loss)
    ref = _reference_loss(cos, y, s=S, m=M)
    assert jnp.allclose(loss, ref, rtol=1e-4, atol=5e-4), (loss, ref)

    # Check 2: multi-tile grid with ragged N and C (row/col padding masks,
    # the online log-sum-exp across class tiles, and the analytic-margin
    # finalize are all exercised).
    N2, C2 = 20, 300
    cos2 = jnp.tanh(jax.random.normal(k3, (N2, C2), dtype=jnp.float32))
    y2 = jax.random.randint(k4, (N2,), 0, C2, dtype=jnp.int32)
    loss2 = amsoftmax_loss(cos2, y2, s=S, m=M, tile_n=8, tile_c=128)
    jax.block_until_ready(loss2)
    ref2 = _reference_loss(cos2, y2, s=S, m=M)
    assert jnp.allclose(loss2, ref2, rtol=1e-4, atol=5e-4), (loss2, ref2)

    # Check 3: bf16 streaming path (native-dtype tiles upcast in-kernel),
    # default tile selection splits the batch into two row tiles.
    N3, C3 = 32, 256
    cos3 = jnp.tanh(jax.random.normal(k5, (N3, C3), dtype=jnp.float32)
                    ).astype(jnp.bfloat16)
    y3 = jax.random.randint(k6, (N3,), 0, C3, dtype=jnp.int32)
    loss3 = amsoftmax_loss(cos3, y3, s=S, m=M)
    jax.block_until_ready(loss3)
    ref3 = _reference_loss(cos3, y3, s=S, m=M)
    assert jnp.allclose(loss3, ref3, rtol=1e-4, atol=2e-3), (loss3, ref3)

    print("KERNEL_OK")
</pallas_src>

<mosaic_0001>
module attributes {stable_mosaic.version = 11 : i64} {
  func.func @_amsoftmax_kernel(%arg0: i32, %arg1: i32, %arg2: memref<8x32xf32, #tpu.memory_space<vmem>>, %arg3: memref<8x1xi32, #tpu.memory_space<vmem>>, %arg4: memref<1x8x128xf32, #tpu.memory_space<vmem>>, %arg5: memref<8x1xf32, #tpu.memory_space<vmem>>, %arg6: memref<8x1xf32, #tpu.memory_space<vmem>>, %arg7: memref<8x1xf32, #tpu.memory_space<vmem>>) attributes {dimension_semantics = [#tpu.dimension_semantics<parallel>, #tpu.dimension_semantics<arbitrary>], iteration_bounds = array<i64: 1, 1>, scalar_prefetch = 0 : i64, scratch_operands = 3 : i64, tpu.core_type = #tpu.core_type<tc>, window_params = [{transform_indices = @transform_0, window_bounds = array<i64: 8, 32>}, {transform_indices = @transform_1, window_bounds = array<i64: 8, 1>}, {transform_indices = @transform_2, window_bounds = array<i64: 1, 8, 128>}]} {
    %c0_i32 = arith.constant 0 : i32
    %0 = arith.cmpi eq, %arg1, %c0_i32 : i32
    %1 = arith.extui %0 : i1 to i32
    %c0_i32_0 = arith.constant 0 : i32
    %2 = arith.cmpi ne, %1, %c0_i32_0 : i32
    scf.if %2 {
      %cst_22 = arith.constant 0xFF800000 : f32
      %39 = vector.broadcast %cst_22 : f32 to vector<8x1xf32>
      %c0_23 = arith.constant 0 : index
      %c0_24 = arith.constant 0 : index
      %40 = vector.load %arg5[%c0_23, %c0_24] : memref<8x1xf32, #tpu.memory_space<vmem>>, vector<8x1xf32>
      tpu.vector_store %arg5[%c0_23, %c0_24], %39 {strides = array<i32>} : memref<8x1xf32, #tpu.memory_space<vmem>>, vector<8x1xf32>,
      %cst_25 = arith.constant 0.000000e+00 : f32
      %41 = vector.broadcast %cst_25 : f32 to vector<8x1xf32>
      %c0_26 = arith.constant 0 : index
      %c0_27 = arith.constant 0 : index
      %42 = vector.load %arg6[%c0_26, %c0_27] : memref<8x1xf32, #tpu.memory_space<vmem>>, vector<8x1xf32>
      tpu.vector_store %arg6[%c0_26, %c0_27], %41 {strides = array<i32>} : memref<8x1xf32, #tpu.memory_space<vmem>>, vector<8x1xf32>,
      %cst_28 = arith.constant 0.000000e+00 : f32
      %43 = vector.broadcast %cst_28 : f32 to vector<8x1xf32>
      %c0_29 = arith.constant 0 : index
      %c0_30 = arith.constant 0 : index
      %44 = vector.load %arg7[%c0_29, %c0_30] : memref<8x1xf32, #tpu.memory_space<vmem>>, vector<8x1xf32>
      tpu.vector_store %arg7[%c0_29, %c0_30], %43 {strides = array<i32>} : memref<8x1xf32, #tpu.memory_space<vmem>>, vector<8x1xf32>,
    } else {
    }
    %c0 = arith.constant 0 : index
    %c0_1 = arith.constant 0 : index
    %3 = vector.load %arg2[%c0, %c0_1] : memref<8x32xf32, #tpu.memory_space<vmem>>, vector<8x32xf32>
    %c0_2 = arith.constant 0 : index
    %c0_3 = arith.constant 0 : index
    %4 = vector.load %arg3[%c0_2, %c0_3] : memref<8x1xi32, #tpu.memory_space<vmem>>, vector<8x1xi32>
    %c32_i32 = arith.constant 32 : i32
    %5 = arith.muli %arg1, %c32_i32 : i32
    %6 = vector.broadcast %5 : i32 to vector<8x1xi32>
    %7 = arith.subi %4, %6 : vector<8x1xi32>
    %cst = arith.constant 3.000000e+01 : f32
    %8 = vector.broadcast %cst : f32 to vector<8x32xf32>
    %9 = arith.mulf %8, %3 : vector<8x32xf32>
    %10 = tpu.iota {dimensions = array<i32: 1>} : vector<8x32xi32>
    %11 = vector.broadcast %7 : vector<8x1xi32> to vector<8x32xi32>
    %12 = arith.cmpi eq, %10, %11 : vector<8x32xi32>
    %c0_4 = arith.constant 0 : index
    %c0_5 = arith.constant 0 : index
    %13 = vector.load %arg7[%c0_4, %c0_5] : memref<8x1xf32, #tpu.memory_space<vmem>>, vector<8x1xf32>
    %cst_6 = arith.constant 0.000000e+00 : f32
    %14 = vector.broadcast %cst_6 : f32 to vector<8x32xf32>
    %15 = arith.select %12, %9, %14 : vector<8x32xi1>, vector<8x32xf32>
    %cst_7 = arith.constant dense<0.000000e+00> : vector<8xf32>
    %16 = vector.multi_reduction <add>, %15, %cst_7 [1] : vector<8x32xf32> to vector<8xf32>
    %17 = vector.shape_cast %16 : vector<8xf32> to vector<8x1xf32>
    %18 = arith.addf %13, %17 : vector<8x1xf32>
    %c0_8 = arith.constant 0 : index
    %c0_9 = arith.constant 0 : index
    %19 = vector.load %arg7[%c0_8, %c0_9] : memref<8x1xf32, #tpu.memory_space<vmem>>, vector<8x1xf32>
    tpu.vector_store %arg7[%c0_8, %c0_9], %18 {strides = array<i32>} : memref<8x1xf32, #tpu.memory_space<vmem>>, vector<8x1xf32>,
    %c0_10 = arith.constant 0 : index
    %c0_11 = arith.constant 0 : index
    %20 = vector.load %arg5[%c0_10, %c0_11] : memref<8x1xf32, #tpu.memory_space<vmem>>, vector<8x1xf32>
    %cst_12 = arith.constant dense<0xFF800000> : vector<8xf32>
    %21 = vector.multi_reduction <maximumf>, %9, %cst_12 [1] : vector<8x32xf32> to vector<8xf32>
    %22 = vector.shape_cast %21 : vector<8xf32> to vector<8x1xf32>
    %23 = arith.maximumf %20, %22 : vector<8x1xf32>
    %24 = arith.subf %20, %23 : vector<8x1xf32>
    %25 = math.exp %24 : vector<8x1xf32>
    %c0_13 = arith.constant 0 : index
    %c0_14 = arith.constant 0 : index
    %26 = vector.load %arg6[%c0_13, %c0_14] : memref<8x1xf32, #tpu.memory_space<vmem>>, vector<8x1xf32>
    %27 = arith.mulf %25, %26 : vector<8x1xf32>
    %28 = vector.broadcast %23 : vector<8x1xf32> to vector<8x32xf32>
    %29 = arith.subf %9, %28 : vector<8x32xf32>
    %30 = math.exp %29 : vector<8x32xf32>
    %cst_15 = arith.constant dense<0.000000e+00> : vector<8xf32>
    %31 = vector.multi_reduction <add>, %30, %cst_15 [1] : vector<8x32xf32> to vector<8xf32>
    %32 = vector.shape_cast %31 : vector<8xf32> to vector<8x1xf32>
    %33 = arith.addf %27, %32 : vector<8x1xf32>
    %c0_16 = arith.constant 0 : index
    %c0_17 = arith.constant 0 : index
    %34 = vector.load %arg6[%c0_16, %c0_17] : memref<8x1xf32, #tpu.memory_space<vmem>>, vector<8x1xf32>
    tpu.vector_store %arg6[%c0_16, %c0_17], %33 {strides = array<i32>} : memref<8x1xf32, #tpu.memory_space<vmem>>, vector<8x1xf32>,
    %c0_18 = arith.constant 0 : index
    %c0_19 = arith.constant 0 : index
    %35 = vector.load %arg5[%c0_18, %c0_19] : memref<8x1xf32, #tpu.memory_space<vmem>>, vector<8x1xf32>
    tpu.vector_store %arg5[%c0_18, %c0_19], %23 {strides = array<i32>} : memref<8x1xf32, #tpu.memory_space<vmem>>, vector<8x1xf32>,
    %c0_i32_20 = arith.constant 0 : i32
    %36 = arith.cmpi eq, %arg1, %c0_i32_20 : i32
    %37 = arith.extui %36 : i1 to i32
    %c0_i32_21 = arith.constant 0 : i32
    %38 = arith.cmpi ne, %37, %c0_i32_21 : i32
    scf.if %38 {
      %c0_22 = arith.constant 0 : index
      %c0_23 = arith.constant 0 : index
      %39 = vector.load %arg5[%c0_22, %c0_23] : memref<8x1xf32, #tpu.memory_space<vmem>>, vector<8x1xf32>
      %c0_24 = arith.constant 0 : index
      %c0_25 = arith.constant 0 : index
      %40 = vector.load %arg6[%c0_24, %c0_25] : memref<8x1xf32, #tpu.memory_space<vmem>>, vector<8x1xf32>
      %c0_26 = arith.constant 0 : index
      %c0_27 = arith.constant 0 : index
      %41 = vector.load %arg7[%c0_26, %c0_27] : memref<8x1xf32, #tpu.memory_space<vmem>>, vector<8x1xf32>
      %42 = arith.subf %41, %39 : vector<8x1xf32>
      %43 = math.exp %42 : vector<8x1xf32>
      %cst_28 = arith.constant -0.999876618 : f32
      %44 = vector.broadcast %cst_28 : f32 to vector<8x1xf32>
      %45 = arith.mulf %44, %43 : vector<8x1xf32>
      %46 = arith.addf %40, %45 : vector<8x1xf32>
      %cst_29 = arith.constant 1.000000e-30 : f32
      %47 = vector.broadcast %cst_29 : f32 to vector<8x1xf32>
      %48 = arith.maximumf %46, %47 : vector<8x1xf32>
      %49 = math.log %48 : vector<8x1xf32>
      %50 = arith.addf %39, %49 : vector<8x1xf32>
      %cst_30 = arith.constant 9.000000e+00 : f32
      %51 = vector.broadcast %cst_30 : f32 to vector<8x1xf32>
      %52 = arith.subf %41, %51 : vector<8x1xf32>
      %53 = arith.subf %50, %52 : vector<8x1xf32>
      %54 = vector.shape_cast %53 : vector<8x1xf32> to vector<1x8x1xf32>
      %cst_31 = arith.constant dense<0.000000e+00> : vector<1xf32>
      %55 = vector.multi_reduction <add>, %54, %cst_31 [1, 2] : vector<1x8x1xf32> to vector<1xf32>
      %56 = vector.shape_cast %55 : vector<1xf32> to vector<1x1x1xf32>
      %57 = vector.extract %56[0, 0, 0] : f32 from vector<1x1x1xf32>
      %58 = vector.broadcast %57 : f32 to vector<1x8x128xf32>
      %c0_32 = arith.constant 0 : index
      %c0_33 = arith.constant 0 : index
      %c0_34 = arith.constant 0 : index
      %59 = vector.load %arg4[%c0_32, %c0_33, %c0_34] : memref<1x8x128xf32, #tpu.memory_space<vmem>>, vector<1x8x128xf32>
      tpu.vector_store %arg4[%c0_32, %c0_33, %c0_34], %58 {strides = array<i32>} : memref<1x8x128xf32, #tpu.memory_space<vmem>>, vector<1x8x128xf32>,
    } else {
    }
    return
  }
  func.func @transform_0(%arg0: i32, %arg1: i32) -> (i32, i32) {
    %c0_i32 = arith.constant 0 : i32
    return %arg0, %arg1 : i32, i32
  }
  func.func @transform_1(%arg0: i32, %arg1: i32) -> (i32, i32) {
    %c0_i32 = arith.constant 0 : i32
    %c0_i32_0 = arith.constant 0 : i32
    return %arg0, %c0_i32 : i32, i32
  }
  func.func @transform_2(%arg0: i32, %arg1: i32) -> (i32, i32, i32) {
    %c0_i32 = arith.constant 0 : i32
    %c0_i32_0 = arith.constant 0 : i32
    %c0_i32_1 = arith.constant 0 : i32
    return %arg0, %c0_i32, %c0_i32_0 : i32, i32, i32
  }
}

</mosaic_0001>

<bundles_post_ra>
// kernel: tpu_custom_call.1
= control target key start
LH: loop header
LB: loop body
LE: loop exit
PB: predicated region body
PF: predicated region fallthrough
CT: control target
= control target key end

     0   :  { %vm34_vm0 = vcmask 261120   ;;  %s185_s0 = inlined_call_operand.vmem [shape: f32[8,32], index: 0, kind: input, shape index: {}]   ;;  %s186_s1 = inlined_call_operand.vmem [shape: s32[8,1], index: 1, kind: input, shape index: {}]   ;;  %s187_s2 = inlined_call_operand.hbm [shape: f32[1,8,128], index: 2, kind: output, shape index: {}]  }
   0x1   :  { %v20_v0 = vld [vmem:[%s185_s0] sm:$0xff] }
   0x2   :  { %7 = vsyncpa [#allocation6], 0  ;;  %v25_v1 = vmul.f32 30.0, %v20_v0  ;;  %v147_v2 = vmov 0   ;;  %vm16_vm1 = vcmask 7168   ;;  %v148_v4 = vmov -inf  }
   0x3   :  { %115 = vset.pattern.permute.xlu0 %v147_v2  ;;  %116 = vset.pattern.permute.xlu1 %v147_v2  ;;  %17 = vst.msk [vmem:[#allocation2] sm:$0xff] %vm16_vm1, %v148_v4  ;;  %v21_v5 = vld [vmem:[%s186_s1] sm:$0xff]  ;;  %v149_v6 = vmov 0.0   ;;  %v26_v11 = vlaneseq  ;;  %s150_s0 = smov [#allocation5]  }
   0x4   :  { %v42_v3 = vsel %vm34_vm0, %v25_v1, -inf  ;;  %19 = vst.msk [vmem:[#allocation4] sm:$0xff] %vm16_vm1, %v149_v6  ;;  %18 = vst.msk [vmem:[#allocation3] sm:$0xff] %vm16_vm1, %v149_v6  ;;  %s100_s1 = sshll.u32 %s150_s0, 4  ;;  %s101_s1 = int_to_ptr.vmem [resolvable:$true] %s100_s1 }
   0x5   :  { %43 = vmax.xlane.f32.xlu0 %v42_v3  ;;  %v27_v12 = vand.u32 127, %v26_v11  ;;  %s125_s14 = scalar_lea.vmem %s101_s1, 128  ;;  %p130_p1 = scmp.lt.s32.totalorder %s101_s1, %s101_s1 }
   0x6   :  { %p126_p0 = scmp.ne.s32.totalorder %s101_s1, %s125_s14  ;;  %p131_p2 = scmp.lt.s32.totalorder %s125_s14, %s125_s14 }
   0x8   :  { %p132_p3 = por %p131_p2, %p130_p1 }
   0xa   :  { %v41_v7 = vld [vmem:[#allocation2] sm:$0xff]  ;;  %p133_p4 = pnand %p132_p3, %p126_p0 }
   0xb   :  { %v32_v21 = vld [vmem:[#allocation4] sm:$0xff]  ;;  %v49_v30 = vld [vmem:[#allocation3] sm:$0xff] }
  0x1b   :  { %29 = vperm.xlu0 %115, %v21_v5  }
  0x8e   :  { %v44_v8 = vpop.xlane.xlu0 %43 }
  0x8f   :  { %v45_v9 = vmax.f32 %v41_v7, %v44_v8 }
  0x91   :  { %v46_v10 = vsub.f32 %v41_v7, %v45_v9  ;;  %64 = vst.msk [vmem:[#allocation2] sm:$0xff] %vm16_vm1, %v45_v9  ;;  %53 = vperm.xlu1 %116, %v45_v9  }
  0x93   :  { %v47_v24 = vmul.f32 1.442695, %v46_v10 }
  0x96   :  { %v30_v13 = vpop.permute.xlu0 %29 }
  0x97   :  { %vm31_vm2 = vcmp.eq.s32.totalorder %v27_v12, %v30_v13 }
  0x98   :  { %v33_v14 = vsel %vm31_vm2, %v25_v1, 0.0  ;;  %v68_v26 = vld [vmem:[#allocation2] sm:$0xff] }
  0x99   :  { %v35_v15 = vsel %vm34_vm0, %v33_v14, 0.0 }
  0xb5   :  { %36 = vadd.xlane.f32.xlu1 %v35_v15 }
 0x10c   :  { %v54_v16 = vpop.permute.xlu1 %53 }
 0x10d   :  { %v56_v17 = vsub.f32 %v25_v1, %v54_v16 }
 0x10f   :  { %v57_v18 = vmul.f32 1.442695, %v56_v17 }
 0x111   :  { %117 = vpow2.f32 %v57_v18 }
 0x112   :  { %119 = vpow2.f32 %v47_v24 }
 0x11e   :  { %v118_v19 = vpop.eup %117 }
 0x11f   :  { %v59_v20 = vsel %vm34_vm0, %v118_v19, 0.0  ;;  %v120_v29 = vpop.eup %119 }
 0x120   :  { %60 = vadd.xlane.f32.xlu1 %v59_v20  ;;  %v50_v31 = vmul.f32 %v120_v29, %v49_v30 }
 0x13e   :  { %v37_v22 = vpop.xlane.xlu1 %36 }
 0x13f   :  { %v38_v23 = vadd.f32 %v37_v22, %v32_v21 }
 0x141   :  { %40 = vst.msk [vmem:[#allocation4] sm:$0xff] %vm16_vm1, %v38_v23 }
 0x148   :  { %v70_v25 = vld [vmem:[#allocation4] sm:$0xff] }
 0x149   :  { %v71_v27 = vsub.f32 %v70_v25, %v68_v26  ;;  %v108_v42 = vadd.f32 -9.0, %v70_v25 }
 0x14b   :  { %v72_v28 = vmul.f32 1.442695, %v71_v27 }
 0x14d   :  { %121 = vpow2.f32 %v72_v28 }
 0x15a   :  { %v122_v34 = vpop.eup %121 }
 0x15b   :  { %v74_v35 = vmul.f32 -0.9998766, %v122_v34 }
 0x1a9   :  { %v61_v32 = vpop.xlane.xlu1 %60 }
 0x1aa   :  { %v62_v33 = vadd.f32 %v61_v32, %v50_v31 }
 0x1ac   :  { %63 = vst.msk [vmem:[#allocation3] sm:$0xff] %vm16_vm1, %v62_v33 }
 0x1b3   :  { %v69_v36 = vld [vmem:[#allocation3] sm:$0xff] }
 0x1b4   :  { %v75_v37 = vadd.f32 %v74_v35, %v69_v36 }
 0x1b6   :  { %v76_v38 = vmax.f32 %v75_v37, 1e-30 }
 0x1b8   :  { %123 = vlog2.f32 %v76_v38 }
 0x1c5   :  { %v124_v39 = vpop.eup %123 }
 0x1c6   :  { %v78_v40 = vmul.f32 0.6931472, %v124_v39 }
 0x1c8   :  { %v79_v41 = vadd.f32 %v78_v40, %v68_v26 }
 0x1ca   :  { %v81_v43 = vsub.f32 %v79_v41, %v108_v42 }
 0x1cc   :  { %v82_v44 = vsel %vm16_vm1, %v81_v43, 0.0 }
 0x1cd   :  { %83 = vadd.xlane.f32.xlu1 %v82_v44 }
 0x256   :  { %v84_v45 = vpop.xlane.xlu1 %83 }
 0x257   :  { %v85_v46 = vrot.slane %v84_v45, 4 }
 0x259   :  { %v86_v47 = vadd.f32 %v85_v46, %v84_v45 }
 0x25b   :  { %v87_v48 = vrot.slane %v86_v47, 2 }
 0x25d   :  { %v88_v49 = vadd.f32 %v87_v48, %v86_v47 }
 0x25f   :  { %v89_v50 = vrot.slane %v88_v49, 1 }
 0x261   :  { %v90_v51 = vadd.f32 %v89_v50, %v88_v49 }
 0x263   :  { %109 = vpush %v90_v51 }
 0x294   :  { %s110_s13 = spop %109 }
 0x295   :  { %v92_v52 = vstv %s110_s13 }
 0x296   :  { %93 = vst [vmem:[#allocation5] sm:$0xff] %v92_v52 }
 0x297   :  { %136 = shalt.err (!%p133_p4)
}
 0x298   :  { %103 = dma.vmem_to_hbm [thread:$0]  %s101_s1, 128, %s187_s2, [#allocation6]  }
 0x299   :  { %145 = dma.done.wait [#allocation6], 128  }
 0x29a   :  { %146 = vsyncadd [#allocation6], 4294967168 }
 0x29b   :  { %107 = vsyncpa [#allocation6], 1 }

</bundles_post_ra>
